<compile_context>
chip_gen: v7x
topology: tpu7x:2x2x1
jax: 0.10.0
libtpu: 0.0.40
codegen_flags: <defaults>
</compile_context>

<pallas_src>
import jax
import jax.numpy as jnp
from jax.experimental import pallas as pl
from jax.experimental.pallas import tpu as pltpu


# ------------------------------------------------------------------ kernel --

def _sigmoid_kernel(x_ref, o_ref):
    # Elementwise sigmoid on one VMEM tile (exp on the EUP, rest on the VPU).
    # Compute in f32: correct on every generation (v5e's VPU/EUP have no bf16
    # path).  The tile is stored in the input dtype, so HBM traffic and VMEM
    # block bytes are unchanged; upcast happens only in vregs.
    # TODO(synk): on v6e/v7x a bf16 compute path would halve vreg traffic; the
    # kernel is HBM-bound either way so it is wall-clock neutral.
    x = x_ref[...].astype(jnp.float32)
    den = 1.0 + jnp.exp(-x)
    o_ref[...] = pl.reciprocal(den, approx=False).astype(o_ref.dtype)


# ---------------------------------------------------------------- wrappers --

_PALLAS_MIN_ELEMENTS = 1 << 20          # below this, XLA fusion beats launch cost
_TARGET_BLOCK_BYTES = 4 * 1024 * 1024   # 4 MiB/block -> ~16 MiB pipelined (v7x-safe)
_MIN_GRID_STEPS = 8                     # keep both v7x TCs busy on big tensors
_LANE_CANDIDATES = (2048, 1024, 512, 256, 128)


def _sublane_pack(dtype):
    """Rows per sublane-packed tile for this dtype (8 f32 / 16 bf16 / 32 int8)."""
    itemsize = jnp.dtype(dtype).itemsize
    return {4: 8, 2: 16, 1: 32}.get(itemsize, 8)


def _pick_lane(total):
    """Largest lane width (multiple of 128, <= 2048) that divides `total`."""
    for lane in _LANE_CANDIDATES:
        if total % lane == 0:
            return lane
    return None


def _pick_tile_rows(rows, lane, dtype):
    """Row-tile size: byte-budget capped, sublane-packed, >= _MIN_GRID_STEPS blocks."""
    itemsize = jnp.dtype(dtype).itemsize
    pack = _sublane_pack(dtype)

    # Per-block byte budget (4 MiB -> 4 buffers ~ 16 MiB, fits 32 MiB scoped VMEM).
    budget_rows = max(pack, (_TARGET_BLOCK_BYTES // (lane * itemsize)))
    tile_rows = min(budget_rows, rows)

    # Keep the grid at least _MIN_GRID_STEPS long when the tensor allows it,
    # so the 'parallel' axis actually has work for both v7x TensorCores.
    if rows >= pack * _MIN_GRID_STEPS:
        cap = max(pack, (rows // _MIN_GRID_STEPS // pack) * pack)
        tile_rows = min(tile_rows, cap)

    # Round down to the packed-sublane multiple unless we cover all rows.
    if tile_rows < rows:
        tile_rows = max(pack, (tile_rows // pack) * pack)
    else:
        tile_rows = rows  # full-extent block dim is always legal
    return tile_rows


def _sigmoid_pallas_2d(x2d):
    """Pallas sigmoid over a balanced, lane-dense 2-D slab (rows, lane)."""
    rows, lane = x2d.shape
    itemsize = jnp.dtype(x2d.dtype).itemsize
    tile_rows = _pick_tile_rows(rows, lane, x2d.dtype)

    grid = (pl.cdiv(rows, tile_rows),)
    total = rows * lane

    return pl.pallas_call(
        _sigmoid_kernel,
        out_shape=jax.ShapeDtypeStruct((rows, lane), x2d.dtype),
        grid_spec=pltpu.PrefetchScalarGridSpec(
            num_scalar_prefetch=0,
            grid=grid,
            # tile_cols == lane == full width -> every block is HBM-contiguous.
            in_specs=[pl.BlockSpec((tile_rows, lane), lambda i: (i, 0))],
            out_specs=pl.BlockSpec((tile_rows, lane), lambda i: (i, 0)),
        ),
        compiler_params=pltpu.CompilerParams(
            dimension_semantics=("parallel",),
            # v7x ceiling: 64 MiB physical VMEM; 4x 4 MiB block buffers fit 32 MiB.
            vmem_limit_bytes=32 * 1024 * 1024,
        ),
        cost_estimate=pl.CostEstimate(
            flops=4 * total,
            transcendentals=total,
            bytes_accessed=2 * total * itemsize,  # read + write, no aliasing
        ),
    )(x2d)


def normalize_decoder_output(x_dec, *, force_pallas=False):
    """Pallas-backed equivalent of torch.sigmoid(x_dec) for NCHW input."""
    total = x_dec.size
    if total < _PALLAS_MIN_ELEMENTS and not force_pallas:
        # Tiny decoder outputs: kernel launch + pipeline prologue dominates;
        # let XLA fuse a plain sigmoid.
        return jax.nn.sigmoid(x_dec)

    lane = _pick_lane(total)
    if lane is None:
        # TODO(synk): total not a multiple of 128 -- a padded Pallas path would
        # cost an extra HBM copy, so fall back to the fused XLA sigmoid.
        return jax.nn.sigmoid(x_dec)

    rows = total // lane
    x2d = x_dec.reshape(rows, lane)
    return _sigmoid_pallas_2d(x2d).reshape(x_dec.shape)


# ------------------------------------------------------------------- model --

class BaseModelPallas:
    """JAX/Pallas port of the PyTorch BaseModel.

    The base class defines no trainable parameters; subclasses create the GP
    models.  A minimal concrete `_do_gp_anticipation` is provided so the
    forward pass exercises the one concrete piece of compute the base class
    owns (`_normalize_decoder_output`, i.e. sigmoid) end-to-end.
    """

    def __init__(self, cfg=None):
        self.normalize_channel_0 = normalize_decoder_output
        self._create_gp_models()

    def __call__(self, x):
        final_outputs = {}
        gp_outputs = self._do_gp_anticipation(x)
        final_outputs.update(gp_outputs)
        return final_outputs

    def _create_gp_models(self):
        # TODO(synk): abstract in the reference (raises NotImplementedError);
        # the base class owns no parameters, so nothing to create here.
        pass

    def _do_gp_anticipation(self, x):
        # TODO(synk): abstract in the reference; here we treat the input as
        # the decoder output and apply the base class's normalization.
        x_dec_c0 = self._normalize_decoder_output(x)
        return {"occ_estimate": x_dec_c0}

    def _normalize_decoder_output(self, x_dec):
        return self.normalize_channel_0(x_dec)


# -------------------------------------------------------------------- test --

if __name__ == "__main__":
    key = jax.random.PRNGKey(0)

    # Decoder-output-like tensor, NCHW: batch=2, channels=4, spatial=16x16.
    x_small = jax.random.normal(key, (2, 4, 16, 16), dtype=jnp.float32)
    ref_small = jax.nn.sigmoid(x_small)

    # 1) Exercise the Pallas kernel directly on the small input (1x2048 slab).
    y_pallas = jax.block_until_ready(
        normalize_decoder_output(x_small, force_pallas=True))
    assert y_pallas.shape == x_small.shape and y_pallas.dtype == x_small.dtype
    assert jnp.max(jnp.abs(y_pallas - ref_small)) < 1e-5

    # 2) Exercise a wider map (16x2048 slab) through the Pallas path.
    x_med = jax.random.normal(jax.random.PRNGKey(0), (2, 4, 64, 64),
                              dtype=jnp.float32)
    y_med = jax.block_until_ready(
        normalize_decoder_output(x_med, force_pallas=True))
    assert jnp.max(jnp.abs(y_med - jax.nn.sigmoid(x_med))) < 1e-5

    # 3) bf16 path: tile_rows respects the (16,128) packed tile.
    x_bf16 = jax.random.normal(jax.random.PRNGKey(1), (2, 4, 64, 64),
                               dtype=jnp.bfloat16)
    y_bf16 = jax.block_until_ready(
        normalize_decoder_output(x_bf16, force_pallas=True))
    err = jnp.max(jnp.abs(y_bf16.astype(jnp.float32)
                          - jax.nn.sigmoid(x_bf16.astype(jnp.float32))))
    assert err < 2e-2

    # 4) Full model forward (dispatch heuristic: tiny input -> fused XLA path).
    model = BaseModelPallas()
    out = model(x_small)
    y_model = jax.block_until_ready(out["occ_estimate"])
    assert y_model.shape == x_small.shape and y_model.dtype == x_small.dtype
    assert jnp.max(jnp.abs(y_model - ref_small)) < 1e-5

    print("KERNEL_OK")
</pallas_src>

<mosaic_0001>
module attributes {stable_mosaic.version = 11 : i64} {
  func.func @_sigmoid_kernel(%arg0: i32, %arg1: memref<1x2048xf32, #tpu.memory_space<vmem>>, %arg2: memref<1x2048xf32, #tpu.memory_space<vmem>>) attributes {dimension_semantics = [#tpu.dimension_semantics<parallel>], iteration_bounds = array<i64: 1>, scalar_prefetch = 0 : i64, scratch_operands = 0 : i64, tpu.core_type = #tpu.core_type<tc>, window_params = [{transform_indices = @transform_0, window_bounds = array<i64: 1, 2048>}, {transform_indices = @transform_1, window_bounds = array<i64: 1, 2048>}]} {
    %c0 = arith.constant 0 : index
    %c0_0 = arith.constant 0 : index
    %0 = vector.load %arg1[%c0, %c0_0] : memref<1x2048xf32, #tpu.memory_space<vmem>>, vector<1x2048xf32>
    %cst = arith.constant 0.000000e+00 : f32
    %1 = vector.broadcast %cst : f32 to vector<1x2048xf32>
    %2 = arith.subf %1, %0 : vector<1x2048xf32>
    %3 = math.exp %2 : vector<1x2048xf32>
    %cst_1 = arith.constant 1.000000e+00 : f32
    %4 = vector.broadcast %cst_1 : f32 to vector<1x2048xf32>
    %5 = arith.addf %4, %3 : vector<1x2048xf32>
    %6 = tpu.reciprocal %5 : vector<1x2048xf32> -> vector<1x2048xf32>
    %c0_2 = arith.constant 0 : index
    %c0_3 = arith.constant 0 : index
    %7 = vector.load %arg2[%c0_2, %c0_3] : memref<1x2048xf32, #tpu.memory_space<vmem>>, vector<1x2048xf32>
    tpu.vector_store %arg2[%c0_2, %c0_3], %6 {strides = array<i32>} : memref<1x2048xf32, #tpu.memory_space<vmem>>, vector<1x2048xf32>,
    return
  }
  func.func @transform_0(%arg0: i32) -> (i32, i32) {
    %c0_i32 = arith.constant 0 : i32
    %c0_i32_0 = arith.constant 0 : i32
    return %arg0, %c0_i32 : i32, i32
  }
  func.func @transform_1(%arg0: i32) -> (i32, i32) {
    %c0_i32 = arith.constant 0 : i32
    %c0_i32_0 = arith.constant 0 : i32
    return %arg0, %c0_i32 : i32, i32
  }
}

</mosaic_0001>

<bundles_post_ra>
// kernel: tpu_custom_call.1
= control target key start
LH: loop header
LB: loop body
LE: loop exit
PB: predicated region body
PF: predicated region fallthrough
CT: control target
= control target key end

     0   :  { %6 = vsyncpa [#allocation3], 0  ;;  %s144_s0 = inlined_call_operand.hbm [shape: f32[1,2048], index: 0, kind: input, shape index: {}]   ;;  %s145_s1 = inlined_call_operand.hbm [shape: f32[1,2048], index: 1, kind: output, shape index: {}]  }
   0x1   :  { %7 = vsyncpa [#allocation4], 0  ;;  %s108_s6 = smov [#allocation2]   ;;  %s60_s10 = scalar_lea.hbm %s144_s0, 256 }
   0x2   :  { %s14_s7 = sshll.u32 %s108_s6, 4  ;;  %p61_p0 = scmp.ne.s32.totalorder %s144_s0, %s60_s10  ;;  %s15_s7 = int_to_ptr.vmem [resolvable:$true] %s14_s7 }
   0x3   :  { %p64_p1 = scmp.lt.u32.totalorder %s60_s10, %s144_s0 }
   0x5   :  { %p66_p2 = pnand %p64_p1, %p61_p0 }
   0x7   :  { %69 = shalt.err (!%p66_p2)
}
   0x8   :  { %s70_s15 = scalar_lea.vmem %s15_s7, 256  ;;  %p75_p4 = scmp.lt.s32.totalorder %s15_s7, %s15_s7 }
   0x9   :  { %p71_p3 = scmp.ne.s32.totalorder %s15_s7, %s70_s15  ;;  %p76_p5 = scmp.lt.s32.totalorder %s70_s15, %s70_s15 }
   0xb   :  { %p77_p6 = por %p76_p5, %p75_p4 }
   0xd   :  { %p78_p7 = pnand %p77_p6, %p71_p3 }
   0xf   :  { %81 = shalt.err (!%p78_p7)
}
  0x10   :  { %17 = dma.hbm_to_vmem [thread:$0]  %s144_s0, 256, %s15_s7, [#allocation3]  }
  0x11   :  { %104 = dma.done.wait [#allocation3], 256  }
  0x12   :  { %105 = vsyncadd [#allocation3], 4294967040  ;;  %v21_v0 = vld [vmem:[#allocation2] sm:$0xff]  ;;  %v22_v1 = vld [vmem:[#allocation2 + $0x8] sm:$0xff]  ;;  %s109_s18 = smov [#allocation5]  }
  0x13   :  { %v23_v2 = vsub.f32 0.0, %v21_v0  ;;  %v24_v3 = vsub.f32 0.0, %v22_v1  ;;  %s41_s19 = sshll.u32 %s109_s18, 4  ;;  %s42_s19 = int_to_ptr.vmem [resolvable:$true] %s41_s19 }
  0x14   :  { %s82_s0 = scalar_lea.vmem %s42_s19, 256  ;;  %p87_p9 = scmp.lt.s32.totalorder %s42_s19, %s42_s19 }
  0x15   :  { %v25_v4 = vmul.f32 1.442695, %v23_v2  ;;  %v27_v5 = vmul.f32 1.442695, %v24_v3  ;;  %p83_p8 = scmp.ne.s32.totalorder %s42_s19, %s82_s0  ;;  %p88_p10 = scmp.lt.s32.totalorder %s82_s0, %s82_s0 }
  0x17   :  { %52 = vpow2.f32 %v25_v4  ;;  %p89_p11 = por %p88_p10, %p87_p9 }
  0x18   :  { %54 = vpow2.f32 %v27_v5 }
  0x19   :  { %p90_p12 = pnand %p89_p11, %p83_p8 }
  0x21   :  { %v53_v6 = vpop.eup %52 }
  0x22   :  { %v55_v7 = vpop.eup %54  ;;  %v29_v8 = vadd.f32 1.0, %v53_v6 }
  0x23   :  { %v30_v9 = vadd.f32 1.0, %v55_v7 }
  0x24   :  { %56 = vrcp.f32 %v29_v8 }
  0x25   :  { %58 = vrcp.f32 %v30_v9 }
  0x2e   :  { %v57_v10 = vpop.eup %56 }
  0x2f   :  { %v59_v11 = vpop.eup %58  ;;  %33 = vst [vmem:[#allocation5] sm:$0xff] %v57_v10 }
  0x30   :  { %34 = vst [vmem:[#allocation5 + $0x8] sm:$0xff] %v59_v11 }
  0x31   :  { %93 = shalt.err (!%p90_p12)
}
  0x32   :  { %s94_s22 = scalar_lea.hbm %s145_s1, 256 }
  0x33   :  { %p95_p13 = scmp.ne.s32.totalorder %s145_s1, %s94_s22  ;;  %p98_p0 = scmp.lt.u32.totalorder %s94_s22, %s145_s1 }
  0x35   :  { %p100_p1 = pnand %p98_p0, %p95_p13 }
  0x37   :  { %103 = shalt.err (!%p100_p1)
}
  0x38   :  { %44 = dma.vmem_to_hbm [thread:$0]  %s42_s19, 256, %s145_s1, [#allocation4]  }
  0x39   :  { %106 = dma.done.wait [#allocation4], 256  }
  0x3a   :  { %107 = vsyncadd [#allocation4], 4294967040 }
  0x3b   :  { %48 = vsyncpa [#allocation3], 1 }
  0x3c   :  { %49 = vsyncpa [#allocation4], 1 }

</bundles_post_ra>
